<compile_context>
chip_gen: v7x
topology: tpu7x:2x2x1
jax: 0.10.0
libtpu: 0.0.40
codegen_flags: <defaults>
</compile_context>

<pallas_src>
import numpy as np

import jax
import jax.numpy as jnp
from jax.experimental import pallas as pl
from jax.experimental.pallas import tpu as pltpu

# --- Hyperparameters (small, consistent with the nlp-tutorial TextCNN) ---------
VOCAB_SIZE = 16
EMBEDDING_SIZE = 8
SEQUENCE_LENGTH = 8
NUM_CLASSES = 2
FILTER_SIZES = (2, 3, 4)
NUM_FILTERS = 4
NUM_FILTERS_TOTAL = NUM_FILTERS * len(FILTER_SIZES)
BATCH = 2

FS_MAX = max(FILTER_SIZES)
K_FUSED = FS_MAX * VOCAB_SIZE        # 64 lanes of fused (shift, vocab) columns
LANES = 128                          # lane-dense logits (padded to 128)
SUBLANES = 8
TAIL_PAD = SUBLANES                  # >= FS_MAX - 1, keeps id rows sublane-aligned


def textcnn_kernel(ids_ref, wconv_ref, bconv_ref, mask_ref, wlin_ref, blin_ref, out_ref):
    """Fused TextCNN forward (embedding folded into the conv weight offline).

    ids_ref   : (BS_PAD + TAIL_PAD, 1) int32  batch-padded token ids + tail pad
    wconv_ref : (FS_MAX*V, 3*F) f32   embedding x conv weights, fused offline
    bconv_ref : (1, 3*F)        f32   per-branch conv bias
    mask_ref  : (BS_PAD, 3*F)   f32   static post-ReLU validity mask
    wlin_ref  : (3*F, 128)      f32   final linear weight, zero-padded to 128 lanes
    blin_ref  : (1, 128)        f32   final bias, zero-padded to 128 lanes
    out_ref   : (B_PAD, 128)    f32   logits (only [:B, :NUM_CLASSES] meaningful)
    """
    bs_pad, nf_tot = mask_ref.shape
    b_pad = out_ref.shape[0]
    seq = bs_pad // b_pad
    k_fused = wconv_ref.shape[0]
    v = k_fused // FS_MAX

    # ---- shifted one-hot slab: slab[r, s*V + v] = (ids[r + s] == v) -----------
    # Built with iota compares + ORs only (column ranges per shift are disjoint
    # because ids are clipped to [0, V)), no lane concatenates / relayouts.
    col_iota = jax.lax.broadcasted_iota(jnp.int32, (bs_pad, k_fused), 1)
    hits = None
    for s in range(FS_MAX):
        ids_s = ids_ref[pl.ds(s, bs_pad), :]                  # (BS_PAD, 1) window @ shift s
        hit_s = (ids_s + s * v) == col_iota                   # (BS_PAD, K_FUSED)
        hits = hit_s if hits is None else jnp.logical_or(hits, hit_s)
    lhs = hits.astype(jnp.float32)                            # (BS_PAD, K_FUSED)

    # ---- ONE matmul for embedding lookup + all conv branches ------------------
    conv = jnp.dot(lhs, wconv_ref[...],
                   preferred_element_type=jnp.float32)        # (BS_PAD, 3*F)
    h = jnp.maximum(conv + bconv_ref[...], 0.0)               # bias + ReLU
    h = h * mask_ref[...]            # ReLU >= 0, so 0 never exceeds the valid max

    # ---- max-over-time pooling (seq = 8, sublane-aligned reshape) -------------
    pooled = jnp.max(h.reshape(b_pad, seq, nf_tot), axis=1)   # (B_PAD, 3*F)

    # ---- final Linear + Bias, full (8, 128) lane-dense store ------------------
    out_ref[...] = (jnp.dot(pooled, wlin_ref[...],
                            preferred_element_type=jnp.float32)
                    + blin_ref[...])


def prepare_params(emb_table, conv_ws, conv_bs, w_lin, b_lin):
    """One-time numpy parameter prep (hoisted out of the per-call path)."""
    emb = np.asarray(emb_table, np.float32)                   # (V, E)
    w_conv = np.zeros((K_FUSED, NUM_FILTERS_TOTAL), np.float32)
    b_conv = np.zeros((1, NUM_FILTERS_TOTAL), np.float32)
    for i, fs in enumerate(FILTER_SIZES):
        c0, c1 = i * NUM_FILTERS, (i + 1) * NUM_FILTERS
        for s in range(fs):
            # Fold embedding into the conv weight: (V, E) @ (E, F) -> (V, F).
            w_conv[s * VOCAB_SIZE:(s + 1) * VOCAB_SIZE, c0:c1] = (
                emb @ np.asarray(conv_ws[i][s], np.float32))
        b_conv[0, c0:c1] = np.asarray(conv_bs[i], np.float32).reshape(-1)

    w_lin_pad = np.zeros((NUM_FILTERS_TOTAL, LANES), np.float32)
    w_lin_pad[:, :NUM_CLASSES] = np.asarray(w_lin, np.float32)
    b_lin_pad = np.zeros((1, LANES), np.float32)
    b_lin_pad[0, :NUM_CLASSES] = np.asarray(b_lin, np.float32).reshape(-1)

    return (jnp.asarray(w_conv), jnp.asarray(b_conv),
            jnp.asarray(w_lin_pad), jnp.asarray(b_lin_pad))


def _valid_mask(b_pad, seq):
    """Static (BS_PAD, 3*F) post-ReLU validity mask, built with numpy at trace time."""
    m = np.zeros((seq, NUM_FILTERS_TOTAL), np.float32)
    for i, fs in enumerate(FILTER_SIZES):
        m[: seq - fs + 1, i * NUM_FILTERS:(i + 1) * NUM_FILTERS] = 1.0
    return np.tile(m, (b_pad, 1))


@jax.jit
def textcnn_forward(x, w_conv, b_conv, w_lin_pad, b_lin_pad):
    b, seq = x.shape
    b_pad = max(SUBLANES, ((b + SUBLANES - 1) // SUBLANES) * SUBLANES)
    bs_pad = b_pad * seq

    # Token ids: clip (matches jnp.take's clipping), flatten, pad batch rows to a
    # multiple of 8 plus a sublane-aligned tail for the shifted windows.
    ids = jnp.clip(x.astype(jnp.int32), 0, VOCAB_SIZE - 1).reshape(-1)
    ids = jnp.pad(ids, (0, bs_pad + TAIL_PAD - b * seq)).reshape(-1, 1)

    mask = jnp.asarray(_valid_mask(b_pad, seq))               # trace-time constant

    vmem = pl.BlockSpec(memory_space=pltpu.MemorySpace.VMEM)
    out_padded = pl.pallas_call(
        textcnn_kernel,
        out_shape=jax.ShapeDtypeStruct((b_pad, LANES), jnp.float32),
        in_specs=[vmem] * 6,
        out_specs=vmem,
    )(ids, w_conv, b_conv, mask, w_lin_pad, b_lin_pad)
    return out_padded[:b, :NUM_CLASSES]


def textcnn_reference(x, emb_table, conv_ws, conv_bs, w_lin, b_lin):
    """Plain-JAX reference (mirrors the PyTorch forward exactly)."""
    emb = jnp.take(emb_table, x, axis=0)                      # (B, S, E)
    pooled_outputs = []
    for i, fs in enumerate(FILTER_SIZES):
        L = SEQUENCE_LENGTH - fs + 1
        acc = jnp.zeros((x.shape[0], L, NUM_FILTERS), jnp.float32)
        for s in range(fs):
            acc = acc + jnp.einsum("ble,ef->blf", emb[:, s:s + L, :], conv_ws[i][s])
        h = jax.nn.relu(acc + conv_bs[i][None, :, :])         # (B, L, F)
        pooled_outputs.append(jnp.max(h, axis=1))             # (B, F)
    h_pool_flat = jnp.concatenate(pooled_outputs, axis=-1)    # (B, 3*F)
    return h_pool_flat @ w_lin + b_lin


if __name__ == "__main__":
    key = jax.random.PRNGKey(0)
    k_x, k_emb, k_lin, *k_conv = jax.random.split(key, 3 + 2 * len(FILTER_SIZES))

    # Token indices (the module's input X: (batch, sequence_length) int ids).
    x = jax.random.randint(k_x, (BATCH, SEQUENCE_LENGTH), 0, VOCAB_SIZE, dtype=jnp.int32)

    # Parameters (deterministic synthetic init; shapes match the nn.Module).
    emb_table = jax.random.normal(k_emb, (VOCAB_SIZE, EMBEDDING_SIZE), jnp.float32) * 0.1
    conv_ws, conv_bs = [], []
    for i, fs in enumerate(FILTER_SIZES):
        conv_ws.append(jax.random.normal(k_conv[2 * i], (fs, EMBEDDING_SIZE, NUM_FILTERS),
                                         jnp.float32) * 0.1)
        conv_bs.append(jax.random.normal(k_conv[2 * i + 1], (1, NUM_FILTERS),
                                         jnp.float32) * 0.1)
    # nn.Linear(num_filters_total, num_classes, bias=False): stored pre-transposed.
    w_lin = jax.random.normal(k_lin, (NUM_FILTERS_TOTAL, NUM_CLASSES), jnp.float32) * 0.1
    # self.Bias = nn.Parameter(torch.zeros([num_classes]))
    b_lin = jnp.zeros((1, NUM_CLASSES), jnp.float32)

    # One-time parameter prep (numpy), then a single jitted dispatch per call.
    w_conv, b_conv, w_lin_pad, b_lin_pad = prepare_params(
        emb_table, conv_ws, conv_bs, w_lin, b_lin)

    out = textcnn_forward(x, w_conv, b_conv, w_lin_pad, b_lin_pad)
    out = jax.block_until_ready(out)

    ref = textcnn_reference(x, emb_table, conv_ws, conv_bs, w_lin, b_lin)
    assert out.shape == (BATCH, NUM_CLASSES)
    assert jnp.allclose(out, ref, atol=1e-5, rtol=1e-5), (out, ref)

    print("KERNEL_OK")
</pallas_src>

<mosaic_0001>
module attributes {stable_mosaic.version = 11 : i64} {
  func.func @textcnn_kernel(%arg0: memref<72x1xi32, #tpu.memory_space<vmem>>, %arg1: memref<64x12xf32, #tpu.memory_space<vmem>>, %arg2: memref<1x12xf32, #tpu.memory_space<vmem>>, %arg3: memref<64x12xf32, #tpu.memory_space<vmem>>, %arg4: memref<12x128xf32, #tpu.memory_space<vmem>>, %arg5: memref<1x128xf32, #tpu.memory_space<vmem>>, %arg6: memref<8x128xf32, #tpu.memory_space<vmem>>) attributes {dimension_semantics = [], scalar_prefetch = 0 : i64, scratch_operands = 0 : i64, tpu.core_type = #tpu.core_type<tc>} {
    %0 = tpu.iota {dimensions = array<i32: 1>} : vector<64x64xi32>
    %c0 = arith.constant 0 : index
    %c0_0 = arith.constant 0 : index
    %1 = vector.load %arg0[%c0, %c0_0] : memref<72x1xi32, #tpu.memory_space<vmem>>, vector<64x1xi32>
    %c0_i32 = arith.constant 0 : i32
    %2 = vector.broadcast %c0_i32 : i32 to vector<64x1xi32>
    %3 = arith.addi %1, %2 : vector<64x1xi32>
    %4 = vector.broadcast %3 : vector<64x1xi32> to vector<64x64xi32>
    %5 = arith.cmpi eq, %4, %0 : vector<64x64xi32>
    %c1 = arith.constant 1 : index
    %c0_1 = arith.constant 0 : index
    %6 = vector.load %arg0[%c1, %c0_1] : memref<72x1xi32, #tpu.memory_space<vmem>>, vector<64x1xi32>
    %c16_i32 = arith.constant 16 : i32
    %7 = vector.broadcast %c16_i32 : i32 to vector<64x1xi32>
    %8 = arith.addi %6, %7 : vector<64x1xi32>
    %9 = vector.broadcast %8 : vector<64x1xi32> to vector<64x64xi32>
    %10 = arith.cmpi eq, %9, %0 : vector<64x64xi32>
    %11 = arith.ori %5, %10 : vector<64x64xi1>
    %c2 = arith.constant 2 : index
    %c0_2 = arith.constant 0 : index
    %12 = vector.load %arg0[%c2, %c0_2] : memref<72x1xi32, #tpu.memory_space<vmem>>, vector<64x1xi32>
    %c32_i32 = arith.constant 32 : i32
    %13 = vector.broadcast %c32_i32 : i32 to vector<64x1xi32>
    %14 = arith.addi %12, %13 : vector<64x1xi32>
    %15 = vector.broadcast %14 : vector<64x1xi32> to vector<64x64xi32>
    %16 = arith.cmpi eq, %15, %0 : vector<64x64xi32>
    %17 = arith.ori %11, %16 : vector<64x64xi1>
    %c3 = arith.constant 3 : index
    %c0_3 = arith.constant 0 : index
    %18 = vector.load %arg0[%c3, %c0_3] : memref<72x1xi32, #tpu.memory_space<vmem>>, vector<64x1xi32>
    %c48_i32 = arith.constant 48 : i32
    %19 = vector.broadcast %c48_i32 : i32 to vector<64x1xi32>
    %20 = arith.addi %18, %19 : vector<64x1xi32>
    %21 = vector.broadcast %20 : vector<64x1xi32> to vector<64x64xi32>
    %22 = arith.cmpi eq, %21, %0 : vector<64x64xi32>
    %23 = arith.ori %17, %22 : vector<64x64xi1>
    %24 = arith.extui %23 : vector<64x64xi1> to vector<64x64xi32>
    %25 = arith.sitofp %24 : vector<64x64xi32> to vector<64x64xf32>
    %c0_4 = arith.constant 0 : index
    %c0_5 = arith.constant 0 : index
    %26 = vector.load %arg1[%c0_4, %c0_5] : memref<64x12xf32, #tpu.memory_space<vmem>>, vector<64x12xf32>
    %cst = arith.constant dense<0.000000e+00> : vector<64x12xf32>
    %27 = tpu.matmul %25, %26, %cst {dimension_numbers = #tpu.dot_dimension_numbers<[1], [0], [0], [1], [0, 0, 1, 1], [], []>} : vector<64x64xf32>, vector<64x12xf32>, vector<64x12xf32> -> vector<64x12xf32>
    %c0_6 = arith.constant 0 : index
    %c0_7 = arith.constant 0 : index
    %28 = vector.load %arg2[%c0_6, %c0_7] : memref<1x12xf32, #tpu.memory_space<vmem>>, vector<1x12xf32>
    %29 = vector.broadcast %28 : vector<1x12xf32> to vector<64x12xf32>
    %30 = arith.addf %27, %29 : vector<64x12xf32>
    %cst_8 = arith.constant 0.000000e+00 : f32
    %31 = vector.broadcast %cst_8 : f32 to vector<64x12xf32>
    %32 = arith.maximumf %30, %31 : vector<64x12xf32>
    %c0_9 = arith.constant 0 : index
    %c0_10 = arith.constant 0 : index
    %33 = vector.load %arg3[%c0_9, %c0_10] : memref<64x12xf32, #tpu.memory_space<vmem>>, vector<64x12xf32>
    %34 = arith.mulf %32, %33 : vector<64x12xf32>
    %35 = vector.shape_cast %34 : vector<64x12xf32> to vector<8x8x12xf32>
    %cst_11 = arith.constant dense<0xFF800000> : vector<8x12xf32>
    %36 = vector.multi_reduction <maximumf>, %35, %cst_11 [1] : vector<8x8x12xf32> to vector<8x12xf32>
    %c0_12 = arith.constant 0 : index
    %c0_13 = arith.constant 0 : index
    %37 = vector.load %arg4[%c0_12, %c0_13] : memref<12x128xf32, #tpu.memory_space<vmem>>, vector<12x128xf32>
    %cst_14 = arith.constant dense<0.000000e+00> : vector<8x128xf32>
    %38 = tpu.matmul %36, %37, %cst_14 {dimension_numbers = #tpu.dot_dimension_numbers<[1], [0], [0], [1], [0, 0, 1, 1], [], []>} : vector<8x12xf32>, vector<12x128xf32>, vector<8x128xf32> -> vector<8x128xf32>
    %c0_15 = arith.constant 0 : index
    %c0_16 = arith.constant 0 : index
    %39 = vector.load %arg5[%c0_15, %c0_16] : memref<1x128xf32, #tpu.memory_space<vmem>>, vector<1x128xf32>
    %40 = vector.broadcast %39 : vector<1x128xf32> to vector<8x128xf32>
    %41 = arith.addf %38, %40 : vector<8x128xf32>
    %c0_17 = arith.constant 0 : index
    %c0_18 = arith.constant 0 : index
    %42 = vector.load %arg6[%c0_17, %c0_18] : memref<8x128xf32, #tpu.memory_space<vmem>>, vector<8x128xf32>
    tpu.vector_store %arg6[%c0_17, %c0_18], %41 {strides = array<i32>} : memref<8x128xf32, #tpu.memory_space<vmem>>, vector<8x128xf32>,
    return
  }
}

</mosaic_0001>

<bundles_post_ra>
// kernel: textcnn_forward.1
= control target key start
LH: loop header
LB: loop body
LE: loop exit
PB: predicated region body
PF: predicated region fallthrough
CT: control target
= control target key end

     0   :  { %v696_v0 = vmov 0   ;;  %vm972_vm13 = vcmask 523264   ;;  %s965_s0 = inlined_call_operand.vmem [shape: s32[72,1], index: 0, kind: input, shape index: {}]   ;;  %s966_s1 = inlined_call_operand.vmem [shape: f32[64,12], index: 1, kind: input, shape index: {}]   ;;  %s967_s4 = inlined_call_operand.vmem [shape: f32[12,128], index: 4, kind: input, shape index: {}]   ;;  %s968_s2 = inlined_call_operand.vmem [shape: f32[1,12], index: 2, kind: input, shape index: {}]   ;;  %s969_s3 = inlined_call_operand.vmem [shape: f32[64,12], index: 3, kind: input, shape index: {}]   ;;  %s970_s5 = inlined_call_operand.vmem [shape: f32[1,128], index: 5, kind: input, shape index: {}]   ;;  %s971_s6 = inlined_call_operand.vmem [shape: f32[8,128], index: 6, kind: output, shape index: {}]  }
   0x1   :  { %695 = vset.pattern.permute.xlu1 %v696_v0  ;;  %694 = vset.pattern.permute.xlu0 %v696_v0  ;;  %v26_v1 = vld [vmem:[%s965_s0 + $0x8] sm:$0xff]  ;;  %v25_v2 = vld [vmem:[%s965_s0] sm:$0xff]  ;;  %v67_v15 = vld [vmem:[%s965_s0 + $0x11] sm:$0xff] }
   0x2   :  { %v66_v3 = vld [vmem:[%s965_s0 + $0x9] sm:$0xff]  ;;  %37 = vperm.xlu1 %695, %v26_v1   ;;  %34 = vperm.xlu0 %694, %v25_v2   ;;  %v65_v5 = vld [vmem:[%s965_s0 + $0x1] sm:$0xff]  ;;  %v252_v19 = vld [vmem:[%s966_s1 + $0x18] sm:$0xff]  ;;  %v75_v22 = vadd.s32 16, %v67_v15  ;;  %v697_v15 = vmov 0.0  }
   0x3   :  { %v74_v4 = vadd.s32 16, %v66_v3  ;;  %v73_v6 = vadd.s32 16, %v65_v5  ;;  %v122_v7 = vld [vmem:[%s965_s0 + $0xa] sm:$0xff]  ;;  %v121_v8 = vld [vmem:[%s965_s0 + $0x2] sm:$0xff]  ;;  %v68_v26 = vld [vmem:[%s965_s0 + $0x19] sm:$0xff] }
   0x4   :  { %v130_v9 = vadd.s32 32, %v122_v7  ;;  %v129_v10 = vadd.s32 32, %v121_v8  ;;  %v178_v11 = vld [vmem:[%s965_s0 + $0xb] sm:$0xff]  ;;  %v177_v12 = vld [vmem:[%s965_s0 + $0x3] sm:$0xff]  ;;  %v76_v28 = vadd.s32 16, %v68_v26  ;;  %v256_v30 = vld [vmem:[%s966_s1 + $0x38] sm:$0xff]  ;;  %v23_v7 = vlaneseq }
   0x5   :  { %v186_v13 = vadd.s32 48, %v178_v11  ;;  %v185_v14 = vadd.s32 48, %v177_v12  ;;  %v249_v16 = vld [vmem:[%s966_s1] sm:$0xff]  ;;  %v250_v17 = vld [vmem:[%s966_s1 + $0x8] sm:$0xff]  ;;  %v251_v18 = vld [vmem:[%s966_s1 + $0x10] sm:$0xff] }
   0x6   :  { %85 = vperm.xlu1 %695, %v74_v4   ;;  %82 = vperm.xlu0 %694, %v73_v6   ;;  %v661_v20 = vpack.c.bf16 %v250_v17, %v249_v16  ;;  %v665_v21 = vpack.c.bf16 %v252_v19, %v251_v18  ;;  %v253_v23 = vld [vmem:[%s966_s1 + $0x20] sm:$0xff]  ;;  %v254_v24 = vld [vmem:[%s966_s1 + $0x28] sm:$0xff]  ;;  %v27_v25 = vld [vmem:[%s965_s0 + $0x10] sm:$0xff] }
   0x7   :  { %v669_v27 = vpack.c.bf16 %v254_v24, %v253_v23  ;;  %v255_v29 = vld [vmem:[%s966_s1 + $0x30] sm:$0xff]  ;;  %v28_v31 = vld [vmem:[%s965_s0 + $0x18] sm:$0xff]  ;;  %v69_v41 = vld [vmem:[%s965_s0 + $0x21] sm:$0xff] }
   0x8   :  { %662 = vmatprep.subr.bf16.mxu0 %v661_v20  ;;  %681 = vmatprep.subr.bf16.mxu1 %v661_v20  ;;  %v124_v32 = vld [vmem:[%s965_s0 + $0x1a] sm:$0xff]  ;;  %v123_v33 = vld [vmem:[%s965_s0 + $0x12] sm:$0xff]  ;;  %v673_v34 = vpack.c.bf16 %v256_v30, %v255_v29  ;;  %v77_v42 = vadd.s32 16, %v69_v41  ;;  %v70_v44 = vld [vmem:[%s965_s0 + $0x29] sm:$0xff] }
   0x9   :  { %664 = vmatpush3.bf16.msra.mxu0 %v661_v20  ;;  %685 = vmatpush3.bf16.msra.mxu1 %v661_v20  ;;  %v132_v35 = vadd.s32 32, %v124_v32  ;;  %v131_v36 = vadd.s32 32, %v123_v33  ;;  %v180_v37 = vld [vmem:[%s965_s0 + $0x1b] sm:$0xff]  ;;  %v179_v38 = vld [vmem:[%s965_s0 + $0x13] sm:$0xff]  ;;  %v78_v45 = vadd.s32 16, %v70_v44  ;;  %v30_v46 = vld [vmem:[%s965_s0 + $0x28] sm:$0xff] }
   0xa   :  { %141 = vperm.xlu1 %695, %v130_v9   ;;  %138 = vperm.xlu0 %694, %v129_v10   ;;  %v188_v39 = vadd.s32 48, %v180_v37  ;;  %v187_v40 = vadd.s32 48, %v179_v38  ;;  %v29_v43 = vld [vmem:[%s965_s0 + $0x20] sm:$0xff]  ;;  %v31_v49 = vld [vmem:[%s965_s0 + $0x30] sm:$0xff]  ;;  %v32_v56 = vld [vmem:[%s965_s0 + $0x38] sm:$0xff]  ;;  %v856_v10 = vand.u32 127, %v23_v7 }
   0xb   :  { %666 = vmatprep.subr.bf16.mxu0 %v665_v21  ;;  %682 = vmatprep.subr.bf16.mxu1 %v665_v21  ;;  %v125_v47 = vld [vmem:[%s965_s0 + $0x22] sm:$0xff]  ;;  %v126_v50 = vld [vmem:[%s965_s0 + $0x2a] sm:$0xff]  ;;  %v127_v57 = vld [vmem:[%s965_s0 + $0x32] sm:$0xff] }
   0xc   :  { %v133_v48 = vadd.s32 32, %v125_v47  ;;  %v71_v51 = vld [vmem:[%s965_s0 + $0x31] sm:$0xff]  ;;  %v134_v52 = vadd.s32 32, %v126_v50  ;;  %v181_v54 = vld [vmem:[%s965_s0 + $0x23] sm:$0xff]  ;;  %v72_v58 = vld [vmem:[%s965_s0 + $0x39] sm:$0xff]  ;;  %v135_v59 = vadd.s32 32, %v127_v57 }
   0xd   :  { %668 = vmatpush3.bf16.msra.mxu0 %v665_v21  ;;  %686 = vmatpush3.bf16.msra.mxu1 %v665_v21  ;;  %v79_v53 = vadd.s32 16, %v71_v51  ;;  %v189_v55 = vadd.s32 48, %v181_v54  ;;  %v80_v60 = vadd.s32 16, %v72_v58  ;;  %v128_v61 = vld [vmem:[%s965_s0 + $0x3a] sm:$0xff]  ;;  %v182_v62 = vld [vmem:[%s965_s0 + $0x2b] sm:$0xff]  ;;  %v698_v51 = vmov 0.0|0.0  }
   0xe   :  { %197 = vperm.xlu1 %695, %v186_v13   ;;  %194 = vperm.xlu0 %694, %v185_v14   ;;  %v136_v63 = vadd.s32 32, %v128_v61  ;;  %v190_v0 = vadd.s32 48, %v182_v62  ;;  %v184_v1 = vld [vmem:[%s965_s0 + $0x3b] sm:$0xff]  ;;  %v183_v2 = vld [vmem:[%s965_s0 + $0x33] sm:$0xff] }
   0xf   :  { %670 = vmatprep.subr.bf16.mxu0 %v669_v27  ;;  %683 = vmatprep.subr.bf16.mxu1 %v669_v27  ;;  %v192_v3 = vadd.s32 48, %v184_v1  ;;  %v191_v4 = vadd.s32 48, %v183_v2 }
  0x11   :  { %672 = vmatpush3.bf16.msra.mxu0 %v669_v27  ;;  %687 = vmatpush3.bf16.msra.mxu1 %v669_v27 }
  0x12   :  { %88 = vperm.xlu1 %695, %v75_v22   ;;  %40 = vperm.xlu0 %694, %v27_v25  }
  0x13   :  { %674 = vmatprep.subr.bf16.mxu0 %v673_v34  ;;  %684 = vmatprep.subr.bf16.mxu1 %v673_v34 }
  0x15   :  { %676 = vmatpush3.bf16.msra.mxu0 %v673_v34  ;;  %688 = vmatpush3.bf16.msra.mxu1 %v673_v34 }
  0x16   :  { %91 = vperm.xlu1 %695, %v76_v28   ;;  %43 = vperm.xlu0 %694, %v28_v31  }
  0x17   :  { %677 = vmatprep.subr.bf16.mxu1 %v698_v51 }
  0x1a   :  { %147 = vperm.xlu1 %695, %v132_v35   ;;  %144 = vperm.xlu0 %694, %v131_v36  }
  0x1e   :  { %203 = vperm.xlu1 %695, %v188_v39   ;;  %200 = vperm.xlu0 %694, %v187_v40  }
  0x22   :  { %94 = vperm.xlu1 %695, %v77_v42   ;;  %46 = vperm.xlu0 %694, %v29_v43  }
  0x26   :  { %97 = vperm.xlu1 %695, %v78_v45   ;;  %49 = vperm.xlu0 %694, %v30_v46  }
  0x2a   :  { %52 = vperm.xlu1 %695, %v31_v49   ;;  %150 = vperm.xlu0 %694, %v133_v48   ;;  %v475_v48 = vld [vmem:[%s967_s4] sm:$0xff]  ;;  %v476_v49 = vld [vmem:[%s967_s4 + $0x8] sm:$0xf] }
  0x2b   :  { %v678_v50 = vpack.c.bf16 %v476_v49, %v475_v48 }
  0x2e   :  { %153 = vperm.xlu1 %695, %v134_v52   ;;  %100 = vperm.xlu0 %694, %v79_v53   ;;  %v916_v52 = vld [vmem:[%s968_s2] ss:$0 sm:$0xff] }
  0x32   :  { %55 = vperm.xlu1 %695, %v32_v56   ;;  %206 = vperm.xlu0 %694, %v189_v55   ;;  %v403_v56 = vld [vmem:[%s969_s3 + $0x8] sm:$0xff] }
  0x36   :  { %156 = vperm.xlu1 %695, %v135_v59   ;;  %103 = vperm.xlu0 %694, %v80_v60   ;;  %v402_v59 = vld [vmem:[%s969_s3] sm:$0xff] }
  0x3a   :  { %159 = vperm.xlu1 %695, %v136_v63   ;;  %209 = vperm.xlu0 %694, %v190_v0  }
  0x3e   :  { %215 = vperm.xlu1 %695, %v192_v3   ;;  %212 = vperm.xlu0 %694, %v191_v4  }
  0x81   :  { %v38_v5 = vpop.permute.xlu1 %37  ;;  %v35_v6 = vpop.permute.xlu0 %34 }
  0x82   :  { %vm58_vm2 = vcmp.eq.s32.totalorder %v38_v5, %v856_v10  ;;  %vm57_vm4 = vcmp.eq.s32.totalorder %v35_v6, %v856_v10 }
  0x85   :  { %v86_v8 = vpop.permute.xlu1 %85  ;;  %v83_v9 = vpop.permute.xlu0 %82 }
  0x86   :  { %vm106_vm0 = vcmp.eq.s32.totalorder %v86_v8, %v856_v10  ;;  %vm105_vm1 = vcmp.eq.s32.totalorder %v83_v9, %v856_v10 }
  0x87   :  { %vm114_vm5 = vmor %vm58_vm2, %vm106_vm0 }
  0x88   :  { %vm113_vm7 = vmor %vm57_vm4, %vm105_vm1 }
  0x89   :  { %v142_v11 = vpop.permute.xlu1 %141  ;;  %v139_v12 = vpop.permute.xlu0 %138 }
  0x8a   :  { %vm162_vm3 = vcmp.eq.s32.totalorder %v142_v11, %v856_v10  ;;  %vm161_vm6 = vcmp.eq.s32.totalorder %v139_v12, %v856_v10 }
  0x8b   :  { %vm170_vm8 = vmor %vm114_vm5, %vm162_vm3 }
  0x8c   :  { %vm169_vm9 = vmor %vm113_vm7, %vm161_vm6 }
  0x8d   :  { %v198_v13 = vpop.permute.xlu1 %197  ;;  %v195_v14 = vpop.permute.xlu0 %194 }
  0x8e   :  { %vm218_vm10 = vcmp.eq.s32.totalorder %v198_v13, %v856_v10  ;;  %vm217_vm11 = vcmp.eq.s32.totalorder %v195_v14, %v856_v10 }
  0x8f   :  { %vm226_vm12 = vmor %vm170_vm8, %vm218_vm10 }
  0x90   :  { %v588_v16 = vsel %vm226_vm12, 1.0, %v697_v15  ;;  %vm225_vm14 = vmor %vm169_vm9, %vm217_vm11 }
  0x91   :  { %v89_v17 = vpop.permute.xlu1 %88  ;;  %v587_v18 = vsel %vm225_vm14, 1.0, %v697_v15  ;;  %v41_v19 = vpop.permute.xlu0 %40 }
  0x92   :  { %642 = vmatprep.mubr.msk.f32.mxu0 %vm972_vm13, %v587_v18  ;;  %vm107_vm15 = vcmp.eq.s32.totalorder %v89_v17, %v856_v10  ;;  %vm59_vm0 = vcmp.eq.s32.totalorder %v41_v19, %v856_v10  ;;  %v404_v19 = vld [vmem:[%s969_s3 + $0x10] sm:$0xff] }
  0x93   :  { %643 = vmatmul.mubr.msk.f32.vlgmr.msra.gmra.mrb[0].mxu0 %vm972_vm13, %v588_v16  ;;  %vm115_vm4 = vmor %vm59_vm0, %vm107_vm15 }
  0x95   :  { %v92_v20 = vpop.permute.xlu1 %91  ;;  %v44_v21 = vpop.permute.xlu0 %43 }
  0x96   :  { %vm108_vm1 = vcmp.eq.s32.totalorder %v92_v20, %v856_v10  ;;  %vm60_vm2 = vcmp.eq.s32.totalorder %v44_v21, %v856_v10 }
  0x97   :  { %vm116_vm6 = vmor %vm60_vm2, %vm108_vm1 }
  0x99   :  { %v148_v22 = vpop.permute.xlu1 %147  ;;  %v145_v23 = vpop.permute.xlu0 %144 }
  0x9a   :  { %vm164_vm3 = vcmp.eq.s32.totalorder %v148_v22, %v856_v10  ;;  %vm163_vm5 = vcmp.eq.s32.totalorder %v145_v23, %v856_v10 }
  0x9b   :  { %vm172_vm7 = vmor %vm116_vm6, %vm164_vm3 }
  0x9c   :  { %vm171_vm8 = vmor %vm115_vm4, %vm163_vm5 }
  0x9d   :  { %v204_v24 = vpop.permute.xlu1 %203  ;;  %v201_v25 = vpop.permute.xlu0 %200 }
  0x9e   :  { %vm220_vm9 = vcmp.eq.s32.totalorder %v204_v24, %v856_v10  ;;  %vm219_vm10 = vcmp.eq.s32.totalorder %v201_v25, %v856_v10 }
  0x9f   :  { %vm228_vm11 = vmor %vm172_vm7, %vm220_vm9 }
  0xa0   :  { %v590_v26 = vsel %vm228_vm11, 1.0, %v697_v15  ;;  %vm227_vm12 = vmor %vm171_vm8, %vm219_vm10 }
  0xa1   :  { %v589_v27 = vsel %vm227_vm12, 1.0, %v697_v15  ;;  %v95_v28 = vpop.permute.xlu1 %94  ;;  %v47_v29 = vpop.permute.xlu0 %46 }
  0xa2   :  { %645 = vmatprep.mubr.msk.f32.mxu0 %vm972_vm13, %v589_v27  ;;  %vm109_vm14 = vcmp.eq.s32.totalorder %v95_v28, %v856_v10  ;;  %vm61_vm15 = vcmp.eq.s32.totalorder %v47_v29, %v856_v10 }
  0xa3   :  { %646 = vmatmul.mubr.msk.f32.gmra.mrb[2].mxu0 %vm972_vm13, %v590_v26  ;;  %vm117_vm1 = vmor %vm61_vm15, %vm109_vm14 }
  0xa5   :  { %v98_v30 = vpop.permute.xlu1 %97  ;;  %v50_v31 = vpop.permute.xlu0 %49 }
  0xa6   :  { %vm110_vm5 = vcmp.eq.s32.totalorder %v98_v30, %v856_v10  ;;  %vm62_vm6 = vcmp.eq.s32.totalorder %v50_v31, %v856_v10 }
  0xa7   :  { %vm118_vm9 = vmor %vm62_vm6, %vm110_vm5 }
  0xa9   :  { %v53_v32 = vpop.permute.xlu1 %52  ;;  %v151_v33 = vpop.permute.xlu0 %150 }
  0xaa   :  { %vm165_vm0 = vcmp.eq.s32.totalorder %v151_v33, %v856_v10  ;;  %vm63_vm11 = vcmp.eq.s32.totalorder %v53_v32, %v856_v10 }
  0xab   :  { %vm173_vm2 = vmor %vm117_vm1, %vm165_vm0 }
  0xad   :  { %v154_v34 = vpop.permute.xlu1 %153  ;;  %v101_v35 = vpop.permute.xlu0 %100 }
  0xae   :  { %vm166_vm7 = vcmp.eq.s32.totalorder %v154_v34, %v856_v10  ;;  %vm111_vm8 = vcmp.eq.s32.totalorder %v101_v35, %v856_v10 }
  0xaf   :  { %vm174_vm12 = vmor %vm118_vm9, %vm166_vm7  ;;  %vm973_vm7 = vcmask 523264  }
  0xb0   :  { %vm119_vm14 = vmor %vm63_vm11, %vm111_vm8 }
  0xb1   :  { %v56_v36 = vpop.permute.xlu1 %55  ;;  %v207_v37 = vpop.permute.xlu0 %206  ;;  %vm974_vm11 = vmmov %vm973_vm7 }
  0xb2   :  { %vm221_vm3 = vcmp.eq.s32.totalorder %v207_v37, %v856_v10 }
  0xb3   :  { %vm229_vm4 = vmor %vm173_vm2, %vm221_vm3  ;;  %vm64_vm3 = vcmp.eq.s32.totalorder %v56_v36, %v856_v10 }
  0xb4   :  { %v591_v38 = vsel %vm229_vm4, 1.0, %v697_v15 }
  0xb5   :  { %v157_v39 = vpop.permute.xlu1 %156  ;;  %648 = vmatprep.mubr.msk.f32.mxu0 %vm972_vm13, %v591_v38  ;;  %v104_v40 = vpop.permute.xlu0 %103 }
  0xb6   :  { %vm167_vm10 = vcmp.eq.s32.totalorder %v157_v39, %v856_v10  ;;  %vm112_vm15 = vcmp.eq.s32.totalorder %v104_v40, %v856_v10 }
  0xb7   :  { %vm175_vm1 = vmor %vm119_vm14, %vm167_vm10  ;;  %vm699_vm14 = vmmov 1  }
  0xb8   :  { %vm120_vm13 = vmor %vm64_vm3, %vm112_vm15  ;;  %vm494_vm3 = vcmask 1042434  }
  0xb9   :  { %v160_v41 = vpop.permute.xlu1 %159  ;;  %v210_v42 = vpop.permute.xlu0 %209 }
  0xba   :  { %vm222_vm0 = vcmp.eq.s32.totalorder %v210_v42, %v856_v10  ;;  %vm168_vm2 = vcmp.eq.s32.totalorder %v160_v41, %v856_v10 }
  0xbb   :  { %vm230_vm4 = vmor %vm174_vm12, %vm222_vm0  ;;  %vm700_vm0 = vmmov 0  }
  0xbc   :  { %v592_v43 = vsel %vm230_vm4, 1.0, %v697_v15  ;;  %vm176_vm5 = vmor %vm120_vm13, %vm168_vm2  ;;  %vm508_vm13 = vcmask 1043456   ;;  %vm492_vm2 = vcmask 1041409   ;;  %vm496_vm4 = vcmask 1043459  }
  0xbd   :  { %v216_v44 = vpop.permute.xlu1 %215  ;;  %v213_v45 = vpop.permute.xlu0 %212  ;;  %649 = vmatmul.mubr.msk.f32.gmra.mrb[4].mxu0 %vm973_vm7, %v592_v43  ;;  %vm975_vm12 = vmmov %vm973_vm7  ;;  %v407_v43 = vld [vmem:[%s969_s3 + $0x28] sm:$0xff]  ;;  %vm502_vm7 = vcmask 1046534  }
  0xbe   :  { %vm224_vm6 = vcmp.eq.s32.totalorder %v216_v44, %v856_v10  ;;  %vm223_vm8 = vcmp.eq.s32.totalorder %v213_v45, %v856_v10  ;;  %vm679_vm15 = vmpackc.low %vm508_vm13, %vm699_vm14 }
  0xbf   :  { %vm232_vm9 = vmor %vm176_vm5, %vm224_vm6  ;;  %vm498_vm5 = vcmask 1044484   ;;  %vm500_vm6 = vcmask 1045509  }
  0xc0   :  { %v594_v46 = vsel %vm232_vm9, 1.0, %v697_v15  ;;  %vm231_vm10 = vmor %vm175_vm1, %vm223_vm8  ;;  %vm418_vm1 = vcmask 97280   ;;  %vm504_vm8 = vcmask 1047559  }
  0xc1   :  { %v593_v47 = vsel %vm231_vm10, 1.0, %v697_v15 }
  0xc2   :  { %651 = vmatprep.mubr.msk.f32.mxu1 %vm974_vm11, %v593_v47 }
  0xc3   :  { %652 = vmatmul.mubr.msk.f32.vlgmr.msra.gmra.mrb[0].mxu1 %vm975_vm12, %v594_v46  ;;  %v406_v46 = vld [vmem:[%s969_s3 + $0x20] sm:$0xff] }
  0xc4   :  { %680 = vmatpush3.bf16.msk.msra.mxu1 %vm679_vm15, %v678_v50  ;;  %658 = vmatprep.mubr.msk.f32.mxu1 %vm700_vm0, %v697_v15  ;;  %v405_v15 = vld [vmem:[%s969_s3 + $0x18] sm:$0xff] }
 0x166   :  { %v644_v53 = vpop.f32.mrb[0].mxu0 }
 0x167   :  { %v361_v54 = vadd.f32 %v644_v53, %v916_v52  ;;  %v355_v55 = vpop.f32.mrb[1].mxu0 }
 0x168   :  { %v356_v57 = vadd.f32 %v916_v52, %v355_v55  ;;  %v409_v55 = vld [vmem:[%s969_s3 + $0x38] sm:$0xff] }
 0x169   :  { %v395_v58 = vmax.f32 %v361_v54, 0.0 }
 0x16a   :  { %v394_v60 = vmax.f32 %v356_v57, 0.0 }
 0x16b   :  { %v411_v61 = vmul.f32 %v403_v56, %v395_v58 }
 0x16c   :  { %v410_v62 = vmul.f32 %v402_v59, %v394_v60  ;;  %v408_v60 = vld [vmem:[%s969_s3 + $0x30] sm:$0xff] }
 0x16d   :  { %v426_v63 = vsel %vm418_vm1, %v411_v61, -inf }
 0x16e   :  { %v427_v0 = vrot.slane %v426_v63, 4  ;;  %v419_v1 = vsel %vm418_vm1, %v410_v62, -inf }
 0x16f   :  { %v420_v2 = vrot.slane %v419_v1, 4 }
 0x170   :  { %v428_v3 = vmax.f32 %v426_v63, %v427_v0 }
 0x171   :  { %v421_v4 = vmax.f32 %v419_v1, %v420_v2 }
 0x172   :  { %v429_v5 = vrot.slane %v428_v3, 2 }
 0x173   :  { %v422_v6 = vrot.slane %v421_v4, 2 }
 0x174   :  { %v430_v7 = vmax.f32 %v428_v3, %v429_v5 }
 0x175   :  { %v423_v8 = vmax.f32 %v421_v4, %v422_v6 }
 0x176   :  { %v431_v9 = vrot.slane %v430_v7, 1  ;;  %v647_v10 = vpop.f32.mrb[2].mxu0 }
 0x177   :  { %v424_v11 = vrot.slane %v423_v8, 1  ;;  %v371_v12 = vadd.f32 %v647_v10, %v916_v52  ;;  %v365_v13 = vpop.f32.mrb[3].mxu0 }
 0x178   :  { %v432_v14 = vmax.f32 %v430_v7, %v431_v9  ;;  %v366_v16 = vadd.f32 %v916_v52, %v365_v13 }
 0x179   :  { %v425_v17 = vmax.f32 %v423_v8, %v424_v11  ;;  %v397_v18 = vmax.f32 %v371_v12, 0.0 }
 0x17a   :  { %v396_v20 = vmax.f32 %v366_v16, 0.0 }
 0x17b   :  { %v493_v21 = vsel %vm492_vm2, %v432_v14, %v425_v17  ;;  %v413_v22 = vmul.f32 %v405_v15, %v397_v18 }
 0x17c   :  { %v412_v23 = vmul.f32 %v404_v19, %v396_v20 }
 0x17d   :  { %v440_v24 = vsel %vm418_vm1, %v413_v22, -inf }
 0x17e   :  { %v441_v25 = vrot.slane %v440_v24, 4  ;;  %v433_v26 = vsel %vm418_vm1, %v412_v23, -inf }
 0x17f   :  { %v434_v27 = vrot.slane %v433_v26, 4 }
 0x180   :  { %v442_v28 = vmax.f32 %v440_v24, %v441_v25 }
 0x181   :  { %v435_v29 = vmax.f32 %v433_v26, %v434_v27 }
 0x182   :  { %v443_v30 = vrot.slane %v442_v28, 2 }
 0x183   :  { %v436_v31 = vrot.slane %v435_v29, 2 }
 0x184   :  { %v444_v32 = vmax.f32 %v442_v28, %v443_v30  ;;  %v604_v28 = vld [vmem:[%s970_s5] ss:$0 sm:$0xff] }
 0x185   :  { %v437_v33 = vmax.f32 %v435_v29, %v436_v31 }
 0x186   :  { %v445_v34 = vrot.slane %v444_v32, 1 }
 0x187   :  { %v438_v35 = vrot.slane %v437_v33, 1 }
 0x188   :  { %v446_v37 = vmax.f32 %v444_v32, %v445_v34 }
 0x189   :  { %v439_v36 = vmax.f32 %v437_v33, %v438_v35 }
 0x18b   :  { %v495_v38 = vsel %vm494_vm3, %v439_v36, %v493_v21 }
 0x18c   :  { %v497_v39 = vsel %vm496_vm4, %v446_v37, %v495_v38 }
 0x190   :  { %v650_v40 = vpop.f32.mrb[4].mxu0 }
 0x191   :  { %v381_v41 = vadd.f32 %v650_v40, %v916_v52  ;;  %v375_v42 = vpop.f32.mrb[5].mxu0 }
 0x192   :  { %v376_v44 = vadd.f32 %v916_v52, %v375_v42 }
 0x193   :  { %v399_v45 = vmax.f32 %v381_v41, 0.0 }
 0x194   :  { %v398_v47 = vmax.f32 %v376_v44, 0.0 }
 0x195   :  { %v415_v48 = vmul.f32 %v407_v43, %v399_v45 }
 0x196   :  { %v653_v49 = vpop.f32.mrb[0].mxu1  ;;  %v414_v50 = vmul.f32 %v406_v46, %v398_v47 }
 0x197   :  { %v391_v51 = vadd.f32 %v653_v49, %v916_v52  ;;  %v385_v53 = vpop.f32.mrb[1].mxu1  ;;  %v454_v54 = vsel %vm418_vm1, %v415_v48, -inf }
 0x198   :  { %v386_v56 = vadd.f32 %v916_v52, %v385_v53  ;;  %v455_v57 = vrot.slane %v454_v54, 4  ;;  %v447_v58 = vsel %vm418_vm1, %v414_v50, -inf }
 0x199   :  { %v401_v59 = vmax.f32 %v391_v51, 0.0  ;;  %v448_v61 = vrot.slane %v447_v58, 4 }
 0x19a   :  { %v400_v62 = vmax.f32 %v386_v56, 0.0  ;;  %v456_v63 = vmax.f32 %v454_v54, %v455_v57 }
 0x19b   :  { %v417_v0 = vmul.f32 %v409_v55, %v401_v59  ;;  %v449_v1 = vmax.f32 %v447_v58, %v448_v61 }
 0x19c   :  { %v416_v2 = vmul.f32 %v408_v60, %v400_v62  ;;  %v457_v3 = vrot.slane %v456_v63, 2 }
 0x19d   :  { %v468_v4 = vsel %vm418_vm1, %v417_v0, -inf  ;;  %v450_v5 = vrot.slane %v449_v1, 2 }
 0x19e   :  { %v469_v6 = vrot.slane %v468_v4, 4  ;;  %v461_v52 = vsel %vm418_vm1, %v416_v2, -inf  ;;  %v458_v7 = vmax.f32 %v456_v63, %v457_v3 }
 0x19f   :  { %v462_v8 = vrot.slane %v461_v52, 4  ;;  %v451_v9 = vmax.f32 %v449_v1, %v450_v5 }
 0x1a0   :  { %v470_v10 = vmax.f32 %v468_v4, %v469_v6  ;;  %v459_v11 = vrot.slane %v458_v7, 1 }
 0x1a1   :  { %v463_v12 = vmax.f32 %v461_v52, %v462_v8  ;;  %v452_v13 = vrot.slane %v451_v9, 1 }
 0x1a2   :  { %v471_v14 = vrot.slane %v470_v10, 2  ;;  %v460_v18 = vmax.f32 %v458_v7, %v459_v11 }
 0x1a3   :  { %v464_v15 = vrot.slane %v463_v12, 2  ;;  %v453_v16 = vmax.f32 %v451_v9, %v452_v13 }
 0x1a4   :  { %v472_v17 = vmax.f32 %v470_v10, %v471_v14 }
 0x1a5   :  { %v465_v19 = vmax.f32 %v463_v12, %v464_v15  ;;  %v499_v21 = vsel %vm498_vm5, %v453_v16, %v497_v39 }
 0x1a6   :  { %v473_v20 = vrot.slane %v472_v17, 1  ;;  %v501_v23 = vsel %vm500_vm6, %v460_v18, %v499_v21 }
 0x1a7   :  { %v466_v22 = vrot.slane %v465_v19, 1 }
 0x1a8   :  { %v474_v25 = vmax.f32 %v472_v17, %v473_v20 }
 0x1a9   :  { %v467_v24 = vmax.f32 %v465_v19, %v466_v22 }
 0x1ab   :  { %v503_v26 = vsel %vm502_vm7, %v467_v24, %v501_v23 }
 0x1ac   :  { %v505_v27 = vsel %vm504_vm8, %v474_v25, %v503_v26 }
 0x1ad   :  { %659 = vmatmul.mubr.msk.f32.vlgmr.msra.gmra.mrb[2].mxu1 %vm418_vm1, %v505_v27 }
 0x280   :  { %v578_v29 = vpop.f32.mrb[2].mxu1 }
 0x281   :  { %v579_v30 = vadd.f32 %v604_v28, %v578_v29  ;;  %v660_v31 = vpop.f32.mrb[3].mxu1 }
 0x283   :  { %582 = vst [vmem:[%s971_s6] sm:$0xff] %v579_v30 }

</bundles_post_ra>
